<compile_context>
chip_gen: v6e
topology: v6e:2x2x1
jax: 0.10.0
libtpu: 0.0.40
codegen_flags: <defaults>
</compile_context>

<pallas_src>
import functools

import jax
import jax.numpy as jnp
from jax.experimental import pallas as pl
from jax.experimental.pallas import tpu as pltpu


def _cdiv(a, b):
    return -(-a // b)


def _crop_kernel_3d(x_ref, o_ref, *, oh, ow):
    # x_ref: (rows, H, W) VMEM block; o_ref: (rows, Hr, Wr) VMEM block.
    hr = o_ref.shape[1]
    wr = o_ref.shape[2]
    o_ref[...] = x_ref[:, pl.ds(oh, hr), pl.ds(ow, wr)]


def _crop_kernel_flat(x_ref, o_ref, *, start):
    # x_ref: (rows, H*W) VMEM block; o_ref: (rows, Hr*W) block.  Lane-dense copy.
    width = o_ref.shape[1]
    o_ref[...] = x_ref[:, pl.ds(start, width)]


def _vmem_capacity_bytes():
    try:
        info = pltpu.get_tpu_info()
        cap = getattr(info, "vmem_capacity_bytes", None)
        if cap:
            return int(cap)
    except Exception:
        pass
    return 64 * 1024 * 1024  # conservative default (v7x-class)


def _choose_rows_per_step(nc, in_row_elems, out_row_elems, itemsize, budget, quantum):
    """Rows of the folded (N*C) axis handled per grid step.

    Keeps the double-buffered input+output blocks under `budget` bytes, keeps
    >= 4 grid steps when there is enough work (so v7x megacore can shard the
    parallel grid axis), and rounds to `quantum` where the block's
    second-minor dim must obey the (8,128) rule (flattened path).
    Returns 0 if no valid tile fits.
    """
    per_row = (in_row_elems + out_row_elems) * itemsize
    rows = budget // (2 * per_row)          # double-buffered in + out blocks
    rows = min(rows, nc)
    target = _cdiv(nc, 4)                   # aim for >= 4 grid steps
    if target >= quantum:
        rows = min(rows, target)
    if rows < nc:
        rows = (rows // quantum) * quantum  # multiple of quantum or full dim
    return int(rows)


def crop(inputs, reference):
    """Center-crop `inputs` (N, C, H, W) to the spatial size of `reference`.

    Matches PyTorch CropLayer.forward for H >= Hr and W >= Wr (offsets are the
    truncating int((H - Hr) / 2), int((W - Wr) / 2)).  The degenerate PyTorch
    path where `inputs` is spatially smaller than `reference` (negative
    offsets) is NOT supported and raises ValueError.
    """
    N, C, H, W = (int(d) for d in inputs.shape)
    Hr, Wr = int(reference.shape[2]), int(reference.shape[3])
    if H < Hr or W < Wr:
        # TODO(synk): PyTorch's negative-offset slicing (inputs spatially
        # smaller than reference) is a degenerate path of the original module
        # and is not supported here.
        raise ValueError("CropLayer expects inputs spatially >= reference")

    # Truncating division, exactly like int((dst - src) / 2) in PyTorch.
    oh = (H - Hr) // 2
    ow = (W - Wr) // 2

    nc = N * C
    itemsize = jnp.dtype(inputs.dtype).itemsize

    cap = _vmem_capacity_bytes()
    if cap <= 64 * 1024 * 1024:        # v7x-class: 64 MiB VMEM per TensorCore
        budget = 20 * 1024 * 1024
        base_limit = 32 * 1024 * 1024
    else:                              # v5e / v6e: 128 MiB physical VMEM
        budget = 32 * 1024 * 1024
        base_limit = 48 * 1024 * 1024

    # Lane-dense path: only H is cropped -> flatten spatial dims so the copy
    # and the output stores are wide instead of masked Wr-lane stores.
    use_flat = (ow == 0 and Wr == W)
    rows = 0
    if use_flat:
        rows = _choose_rows_per_step(nc, H * W, Hr * W, itemsize, budget, quantum=8)
        if rows == 0:
            use_flat = False
    if not use_flat:
        rows = _choose_rows_per_step(nc, H * W, Hr * Wr, itemsize, budget, quantum=1)
        # TODO(synk): for planes so large that even a single (1, H, W) block
        # exceeds the VMEM budget, an H-tiled variant (element-offset input
        # windows or a manual strided HBM DMA) would be required.
        rows = max(1, rows)

    steps = _cdiv(nc, rows)
    out_row_elems = Hr * (W if use_flat else Wr)
    footprint = 2 * rows * (H * W + out_row_elems) * itemsize
    vmem_limit = max(base_limit, footprint + 4 * 1024 * 1024)
    vmem_limit = min(vmem_limit, (cap * 7) // 8)
    vmem_limit = max(vmem_limit, 16 * 1024 * 1024)

    # Pure data movement: zero flops, read full plane + write cropped plane.
    bytes_accessed = nc * (H * W + Hr * Wr) * itemsize
    cost = pl.CostEstimate(flops=0, transcendentals=0, bytes_accessed=bytes_accessed)
    params = pltpu.CompilerParams(
        dimension_semantics=("parallel",), vmem_limit_bytes=int(vmem_limit))

    # TODO(synk): cropping at DMA time (pl.Element-indexed input windows or a
    # direct strided HBM->HBM copy) would avoid reading the uncropped border
    # entirely, but unaligned (oh, ow, Hr, Wr) windowed DMAs are not
    # guaranteed to lower on all generations, so this version keeps the
    # proven full-plane BlockSpec read.

    if use_flat:
        x2 = inputs.reshape(nc, H * W)
        out = pl.pallas_call(
            functools.partial(_crop_kernel_flat, start=oh * W),
            out_shape=jax.ShapeDtypeStruct((nc, Hr * W), inputs.dtype),
            grid=(steps,),
            in_specs=[pl.BlockSpec((rows, H * W), lambda i: (i, 0))],
            out_specs=pl.BlockSpec((rows, Hr * W), lambda i: (i, 0)),
            compiler_params=params,
            cost_estimate=cost,
        )(x2)
        return out.reshape(N, C, Hr, W)

    x3 = inputs.reshape(nc, H, W)
    out = pl.pallas_call(
        functools.partial(_crop_kernel_3d, oh=oh, ow=ow),
        out_shape=jax.ShapeDtypeStruct((nc, Hr, Wr), inputs.dtype),
        grid=(steps,),
        in_specs=[pl.BlockSpec((rows, H, W), lambda i: (i, 0, 0))],
        out_specs=pl.BlockSpec((rows, Hr, Wr), lambda i: (i, 0, 0)),
        compiler_params=params,
        cost_estimate=cost,
    )(x3)
    return out.reshape(N, C, Hr, Wr)


if __name__ == "__main__":
    key = jax.random.PRNGKey(0)
    k_in, k_ref = jax.random.split(key)

    # inputs (N, C, H, W); reference only matters for its spatial dims
    # (different channel count on purpose, the module only reads dims 2, 3).
    inputs = jax.random.normal(k_in, (2, 4, 16, 16), dtype=jnp.float32)
    reference = jax.random.normal(k_ref, (2, 8, 12, 12), dtype=jnp.float32)

    out = jax.block_until_ready(crop(inputs, reference))
    assert out.shape == (2, 4, 12, 12)
    assert bool(jnp.array_equal(out, inputs[:, :, 2:14, 2:14]))

    # Odd-size crop: offsets truncate exactly like the PyTorch int() cast.
    reference2 = jnp.zeros((1, 1, 13, 11), dtype=jnp.float32)
    out2 = jax.block_until_ready(crop(inputs, reference2))
    assert out2.shape == (2, 4, 13, 11)
    assert bool(jnp.array_equal(out2, inputs[:, :, 1:14, 2:13]))

    # H-only crop exercises the lane-dense flattened path.
    reference3 = jnp.zeros((1, 1, 12, 16), dtype=jnp.float32)
    out3 = jax.block_until_ready(crop(inputs, reference3))
    assert out3.shape == (2, 4, 12, 16)
    assert bool(jnp.array_equal(out3, inputs[:, :, 2:14, :]))

    print("KERNEL_OK")
</pallas_src>

<mosaic_0001>
module attributes {stable_mosaic.version = 11 : i64} {
  func.func @_crop_kernel_3d(%arg0: i32, %arg1: memref<2x16x16xf32, #tpu.memory_space<vmem>>, %arg2: memref<2x12x12xf32, #tpu.memory_space<vmem>>) attributes {dimension_semantics = [#tpu.dimension_semantics<parallel>], iteration_bounds = array<i64: 4>, scalar_prefetch = 0 : i64, scratch_operands = 0 : i64, tpu.core_type = #tpu.core_type<tc>, window_params = [{transform_indices = @transform_0, window_bounds = array<i64: 2, 16, 16>}, {transform_indices = @transform_1, window_bounds = array<i64: 2, 12, 12>}]} {
    %c0 = arith.constant 0 : index
    %c2 = arith.constant 2 : index
    %c2_0 = arith.constant 2 : index
    %0 = vector.load %arg1[%c0, %c2, %c2_0] : memref<2x16x16xf32, #tpu.memory_space<vmem>>, vector<2x12x12xf32>
    %c0_1 = arith.constant 0 : index
    %c0_2 = arith.constant 0 : index
    %c0_3 = arith.constant 0 : index
    %1 = vector.load %arg2[%c0_1, %c0_2, %c0_3] : memref<2x12x12xf32, #tpu.memory_space<vmem>>, vector<2x12x12xf32>
    tpu.vector_store %arg2[%c0_1, %c0_2, %c0_3], %0 {strides = array<i32>} : memref<2x12x12xf32, #tpu.memory_space<vmem>>, vector<2x12x12xf32>,
    return
  }
  func.func @transform_0(%arg0: i32) -> (i32, i32, i32) {
    %c0_i32 = arith.constant 0 : i32
    %c0_i32_0 = arith.constant 0 : i32
    %c0_i32_1 = arith.constant 0 : i32
    return %arg0, %c0_i32, %c0_i32_0 : i32, i32, i32
  }
  func.func @transform_1(%arg0: i32) -> (i32, i32, i32) {
    %c0_i32 = arith.constant 0 : i32
    %c0_i32_0 = arith.constant 0 : i32
    %c0_i32_1 = arith.constant 0 : i32
    return %arg0, %c0_i32, %c0_i32_0 : i32, i32, i32
  }
}

</mosaic_0001>

<bundles_post_ra>
// kernel: tpu_custom_call.1
= control target key start
LH: loop header
LB: loop body
LE: loop exit
PB: predicated region body
PF: predicated region fallthrough
CT: control target
= control target key end

     0   :  { %6 = vsyncpa [#allocation3], 0  ;;  %s475_s0 = inlined_call_operand.hbm [shape: f32[8,16,16], index: 0, kind: input, shape index: {}]   ;;  %s476_s1 = inlined_call_operand.vmem [shape: f32[8,12,12], index: 1, kind: output, shape index: {}]  }
   0x1   :  { %8 = vsyncpa [#allocation3 + $0x1], 0  ;;  %s375_s6 = smov 0   ;;  %s377_s7 = smov 0  }
   0x2   :  { %s379_s8 = smov 0   ;;  %s381_s9 = smov 0  }
   0x3 LB: > { %s237_s10 = sadd.s32 4294967295, %s359_s9   ;;  %s395_s11 = sadd.s32 1, %s359_s9   ;;  %s359_s9 = sphi %s381_s9, %s485_s9   ;;  %s355_s8 = sphi %s379_s8, %s484_s8   ;;  %s351_s7 = sphi %s377_s7, %s483_s7   ;;  %s347_s6 = sphi %s375_s6, %s482_s6  }
   0x4   : > { %s18_s12 = ssub.s32 %s359_s9, %s395_s11  ;;  %s21_s13 = sadd.s32 1, %s355_s8 }
   0x5   : > { %p19_p0 = scmp.eq.s32.totalorder %s18_s12, 0  ;;  %p28_p1 = scmp.ne.s32.totalorder %s355_s8, %s351_s7 }
   0x6   : > { %p29_p2 = scmp.eq.s32.totalorder %s359_s9, 0  ;;  %p34_p3 = scmp.ne.s32.totalorder %s351_s7, %s347_s6 }
   0x7   : > { %s405_s14 = scalar_select %p19_p0, %s355_s8, %s21_s13  }
   0x8   : > { %p30_p4 = por %p29_p2, %p28_p1  ;;  %p35_p5 = scmp.eq.s32.totalorder %s237_s10, 0 }
   0x9   : > { %p261_p6 = scmp.lt.s32.totalorder %s359_s9, 4  ;;  %s84_s16 = sand.u32 1, %s355_s8  }
   0xa   : > { %p410_p7 = por %p35_p5, %p34_p3  ;;  %s241_s17 = sshll.u32 %s84_s16, 5 }
   0xb   : > { %s253_s18 = sshll.u32 %s359_s9, 9  ;;  %s88_s22 = scalar_lea.vmem [#allocation2], %s241_s17 }
   0xc   : > { %s478_s15 = scalar_select %p410_p7, 1, 0 }
   0xd   : > { %s419_s21 = scalar_lea.hbm %s475_s0, %s253_s18  ;;  %s96_s23 = sshll.u32 %s88_s22, 4  ;;  %s421_s23 = int_to_ptr.vmem [resolvable:$true] %s96_s23 }
   0xe   : > { %p423_p8 = pnand %p261_p6, %p30_p4  ;;  %s428_s25 = scalar_lea.sflag [#allocation3], %s84_s16 }
   0xf   : > { %s297_s26 = scalar_lea.hbm %s419_s21, 512  ;;  %s302_s29 = scalar_lea.hbm %s475_s0, 2048 }
  0x10   : > { %p298_p10 = scmp.ne.s32.totalorder %s419_s21, %s297_s26  ;;  %p299_p11 = pneg %p423_p8 }
  0x11   : > { %p303_p0 = scmp.lt.s32.totalorder %s419_s21, %s475_s0  ;;  %p304_p1 = scmp.lt.s32.totalorder %s302_s29, %s297_s26 }
  0x12   : > { %p300_p12 = pnand %p299_p11, %p298_p10 }
  0x13   : > { %p305_p2 = por %p304_p1, %p303_p0 }
  0x14   : > { %p301_p13 = pneg %p300_p12 }
  0x16   : > { %p306_p3 = pnand %p305_p2, %p301_p13 }
  0x18   : > { %309 = shalt.err (!%p306_p3)
}
  0x19   : > { %s310_s3 = scalar_lea.vmem %s421_s23, 512  ;;  %s361_s4 = smov [#allocation2]  }
  0x1a   : > { %p311_p4 = scmp.ne.s32.totalorder %s421_s23, %s310_s3  ;;  %s315_s5 = sshll.u32 %s361_s4, 4  ;;  %s316_s5 = int_to_ptr.vmem [resolvable:$false] %s315_s5 }
  0x1b   : > { %s317_s6 = scalar_lea.vmem %s316_s5, 1024  ;;  %p318_p10 = scmp.lt.s32.totalorder %s421_s23, %s316_s5 }
  0x1c   : > { %p313_p5 = pnand %p311_p4, %p299_p11  ;;  %p319_p12 = scmp.lt.s32.totalorder %s317_s6, %s310_s3 }
  0x1e   : > { %p314_p6 = pneg %p313_p5  ;;  %p320_p9 = por %p319_p12, %p318_p10 }
  0x20   : > { %p321_p7 = pnand %p320_p9, %p314_p6 }
  0x22   : > { %324 = shalt.err (!%p321_p7)
}
  0x23   : > { %s362_s12 = smov 128   ;;  %s363_s13 = smov 8  }
  0x24   : > { %260 = dma.hbm_to_vmem [thread:$0]  (!%p423_p8), %s419_s21, 512, %s421_s23, %s428_s25, %s362_s12, %s362_s12, %s363_s13  }
  0x25   : > { %p104_p11 = scmp.lt.s32.totalorder %s359_s9, 5  ;;  %p480_p13 = scmp.ge.s32.totalorder %s359_s9, 1 }
  0x27   : > { %p105_p0 = pnand %p480_p13, %p104_p11 }
  0x28   : > { %s110_s16 = sand.u32 (!%p105_p0), 1, %s351_s7   ;;  %p481_p7 = scmp.ne.s32.totalorder (!%p105_p0), %s478_s15, 0 }
  0x29   : > { %108 = sbr.rel (%p105_p0) target bundleno = 168 (0xa8), region = 24  ;;  %s246_s17 = sshll.u32 (!%p105_p0), %s110_s16, 5 }
  0x2a   : > { %s111_s18 = scalar_lea.sflag (!%p105_p0), [#allocation3], %s110_s16  ;;  %s114_s19 = scalar_lea.vmem (!%p105_p0), [#allocation2], %s246_s17 }
  0x2e   : > { %342 = dma.done.wait (%p481_p7), %s111_s18, 512  }
  0x2f   : > { %344 = vsyncadd (%p481_p7), %s111_s18, 4294966784  ;;  %v142_v0 = vld [vmem:[%s114_s19 + $0x2] sm:$0xff]  ;;  %v144_v1 = vld [vmem:[%s114_s19 + $0x12] sm:$0xff]  ;;  %s364_s20 = smov 126   ;;  %s247_s21 = sshll.u32 %s237_s10, 1  ;;  %vm162_vm0 = vcmask 97280  }
  0x30   : > { %150 = vrot.lane.b32.xlu0 %v142_v0, %s364_s20  ;;  %154 = vrot.lane.b32.xlu1 %v144_v1, %s364_s20  ;;  %v143_v2 = vld [vmem:[%s114_s19 + $0xa] sm:$0xf]  ;;  %v145_v3 = vld [vmem:[%s114_s19 + $0x1a] sm:$0xf]  ;;  %p136_p8 = scmp.lt.s32.totalorder %s247_s21, 7  ;;  %vm164_vm1 = vcmask 93184  }
  0x32   : > { %s487_s21 = smov (!%p136_p8, %s247_s21), 7 }
  0x33   : > { %s254_s22 = sshll.u32 %s487_s21, 4 }
  0x34   : > { %152 = vrot.lane.b32.xlu0 %v143_v2, %s364_s20  ;;  %156 = vrot.lane.b32.xlu1 %v145_v3, %s364_s20  ;;  %s140_s15 = scalar_lea.vmem %s476_s1, %s254_s22 }
  0xa2   : > { %v151_v4 = vpop.permute.xlu0 %150  ;;  %v155_v5 = vpop.permute.xlu1 %154 }
  0xa3   : > { %163 = vst.msk [vmem:[%s140_s15] sm:$0xff] %vm162_vm0, %v151_v4  ;;  %166 = vst.msk [vmem:[%s140_s15 + $0x10] sm:$0xff] %vm162_vm0, %v155_v5 }
  0xa6   : > { %v153_v6 = vpop.permute.xlu0 %152  ;;  %v157_v7 = vpop.permute.xlu1 %156 }
  0xa7   : > { %165 = vst.msk [vmem:[%s140_s15 + $0x8] sm:$0xf] %vm164_vm1, %v153_v6  ;;  %167 = vst.msk [vmem:[%s140_s15 + $0x18] sm:$0xf] %vm164_vm1, %v157_v7 }
  0xa8 PF: > { %p11_p9 = scmp.ge.s32.totalorder %s395_s11, 6   ;;  %s482_s6 = smov %s351_s7 }
  0xa9   : > { %s483_s7 = smov %s355_s8  ;;  %s484_s8 = smov %s405_s14 }
  0xaa   : > { %s485_s9 = smov %s395_s11  ;;  %13 = sbr.rel (!%p11_p9) target bundleno = 3 (0x3), region = 64 }
  0xaf   :  { %192 = vsyncpa [#allocation3], 1 }
  0xb0   :  { %194 = vsyncpa [#allocation3 + $0x1], 1 }

</bundles_post_ra>
